<compile_context>
chip_gen: v7x
topology: tpu7x:2x2x1
jax: 0.10.0
libtpu: 0.0.40
codegen_flags: <defaults>
</compile_context>

<pallas_src>
import math

import jax
import jax.numpy as jnp
from jax.experimental import pallas as pl
from jax.experimental.pallas import tpu as pltpu


def _round_up(x, m):
    return ((x + m - 1) // m) * m


def critic_kernel(state_ref, action_ref,
                  ws14_ref, wa14_ref, b14_ref,
                  w2_ref, b2_ref, w5_ref, b5_ref,
                  w3_ref, b3_ref, w6_ref, b6_ref,
                  q1_ref, q2_ref):
    H = w2_ref.shape[0]  # hidden width (256)

    # Cast MXU operands to bf16 in VMEM (no extra HBM round trip).
    s = state_ref[...].astype(jnp.bfloat16)
    a = action_ref[...].astype(jnp.bfloat16)

    # Fused layer-1 for BOTH heads: (TB, 2H) = s @ Ws + a @ Wa + [b1||b4]
    h = jnp.dot(s, ws14_ref[...], preferred_element_type=jnp.float32)
    h = h + jnp.dot(a, wa14_ref[...], preferred_element_type=jnp.float32)
    h = jnp.maximum(h + b14_ref[...], 0.0)
    h1 = h[:, :H]        # head-1 activations (slice on a 128-lane boundary)
    h2 = h[:, H:]        # head-2 activations

    # Layer 2 per head: Linear(256 -> 256) + ReLU (bf16 MXU, f32 accumulate).
    g1 = jnp.dot(h1.astype(jnp.bfloat16), w2_ref[...],
                 preferred_element_type=jnp.float32)
    g1 = jnp.maximum(g1 + b2_ref[...], 0.0)
    g2 = jnp.dot(h2.astype(jnp.bfloat16), w5_ref[...],
                 preferred_element_type=jnp.float32)
    g2 = jnp.maximum(g2 + b5_ref[...], 0.0)

    # Layer 3: Linear(256 -> 1) on the VPU/XLU (broadcast-mul + lane reduce)
    # instead of burning a full MXU N-tile for a single output column.
    q1 = jnp.sum(g1 * w3_ref[...], axis=-1, keepdims=True) + b3_ref[...]
    q2 = jnp.sum(g2 * w6_ref[...], axis=-1, keepdims=True) + b6_ref[...]

    q1_ref[...] = q1.astype(q1_ref.dtype)
    q2_ref[...] = q2.astype(q2_ref.dtype)


def critic_forward(state, action, params, *, max_tile=2048):
    """state: (B, state_dim) f32, action: (B, action_dim) f32.
    Returns (q1, q2), each (B, 1) f32."""
    w1, b1, w2, b2, w3, b3, w4, b4, w5, b5, w6, b6 = params

    B, state_dim = state.shape
    action_dim = action.shape[1]

    # --- weight prep (tiny, one-time) -----------------------------------
    # Fuse the two heads' first layers column-wise, split row-wise by source
    # (state rows / action rows) so `sa` never has to be concatenated in HBM.
    w14 = jnp.concatenate([w1, w4], axis=1)                       # (K, 2H)
    ws14 = w14[:state_dim].astype(jnp.bfloat16)                   # (sd, 2H)
    wa14 = w14[state_dim:].astype(jnp.bfloat16)                   # (ad, 2H)
    b14 = jnp.concatenate([b1, b4]).reshape(1, -1).astype(jnp.float32)

    w2c = w2.astype(jnp.bfloat16)
    w5c = w5.astype(jnp.bfloat16)
    b2r = b2.reshape(1, -1).astype(jnp.float32)
    b5r = b5.reshape(1, -1).astype(jnp.float32)
    # Output layers stay f32: they run on the VPU, not the MXU.
    w3r = w3.reshape(1, -1).astype(jnp.float32)                   # (1, H)
    w6r = w6.reshape(1, -1).astype(jnp.float32)
    b3r = b3.reshape(1, 1).astype(jnp.float32)
    b6r = b6.reshape(1, 1).astype(jnp.float32)

    # --- batch tile -------------------------------------------------------
    # Multiple of 16 (bf16 sublane tile); cap so the grid has >=2 steps when
    # the batch allows it (lets the v7x megacore use both TensorCores).
    align = 16 if B >= 16 else 8
    TB = min(max_tile, _round_up(B, align))
    if B >= 2 * align:
        TB = min(TB, _round_up(pl.cdiv(B, 2), align))
    grid = (pl.cdiv(B, TB),)

    def resident(arr):
        # Full-shape block with a constant index_map -> loaded once, stays
        # VMEM-resident for the whole grid.
        return pl.BlockSpec(arr.shape, lambda i: (0, 0))

    in_specs = [
        pl.BlockSpec((TB, state_dim), lambda i: (i, 0)),    # state tile
        pl.BlockSpec((TB, action_dim), lambda i: (i, 0)),   # action tile
        resident(ws14), resident(wa14), resident(b14),
        resident(w2c), resident(b2r),
        resident(w5c), resident(b5r),
        resident(w3r), resident(b3r),
        resident(w6r), resident(b6r),
    ]
    out_specs = [
        pl.BlockSpec((TB, 1), lambda i: (i, 0)),
        pl.BlockSpec((TB, 1), lambda i: (i, 0)),
    ]
    out_shape = [
        jax.ShapeDtypeStruct((B, 1), jnp.float32),
        jax.ShapeDtypeStruct((B, 1), jnp.float32),
    ]

    q1, q2 = pl.pallas_call(
        critic_kernel,
        grid=grid,
        in_specs=in_specs,
        out_specs=out_specs,
        out_shape=out_shape,
        compiler_params=pltpu.CompilerParams(
            dimension_semantics=("parallel",),     # shard batch tiles over TCs
            vmem_limit_bytes=32 * 1024 * 1024,     # TB=2048 peaks ~10 MB
        ),
    )(state, action,
      ws14, wa14, b14,
      w2c, b2r, w5c, b5r,
      w3r, b3r, w6r, b6r)
    return q1, q2


def init_critic_params(key, state_dim, action_dim, hidden=256):
    """Deterministic init mirroring PyTorch nn.Linear default U(-1/sqrt(fan_in), +)."""
    keys = jax.random.split(key, 12)

    def linear(kw, kb, fan_in, fan_out):
        bound = 1.0 / math.sqrt(fan_in)
        w = jax.random.uniform(kw, (fan_in, fan_out), jnp.float32, -bound, bound)
        b = jax.random.uniform(kb, (fan_out,), jnp.float32, -bound, bound)
        return w, b

    in_dim = state_dim + action_dim
    w1, b1 = linear(keys[0], keys[1], in_dim, hidden)
    w2, b2 = linear(keys[2], keys[3], hidden, hidden)
    w3, b3 = linear(keys[4], keys[5], hidden, 1)
    w4, b4 = linear(keys[6], keys[7], in_dim, hidden)
    w5, b5 = linear(keys[8], keys[9], hidden, hidden)
    w6, b6 = linear(keys[10], keys[11], hidden, 1)
    return (w1, b1, w2, b2, w3, b3, w4, b4, w5, b5, w6, b6)


def critic_reference(state, action, params):
    """Pure-JAX reference using the same bf16-MXU / f32-accumulate recipe
    (f32 everywhere on the elementwise path and the final 256->1 layer)."""
    w1, b1, w2, b2, w3, b3, w4, b4, w5, b5, w6, b6 = params
    sa = jnp.concatenate([state, action], axis=1)

    def head(wa, ba, wb, bb, wc, bc):
        h = jnp.dot(sa.astype(jnp.bfloat16), wa.astype(jnp.bfloat16),
                    preferred_element_type=jnp.float32) + ba
        h = jnp.maximum(h, 0.0)
        h = jnp.dot(h.astype(jnp.bfloat16), wb.astype(jnp.bfloat16),
                    preferred_element_type=jnp.float32) + bb
        h = jnp.maximum(h, 0.0)
        q = jnp.dot(h, wc.astype(jnp.float32)) + bc
        return q.reshape(-1, 1)

    return head(w1, b1, w2, b2, w3, b3), head(w4, b4, w5, b5, w6, b6)


if __name__ == "__main__":
    key = jax.random.PRNGKey(0)
    k_param, k_state, k_action = jax.random.split(key, 3)

    batch, state_dim, action_dim = 8, 16, 4

    params = init_critic_params(k_param, state_dim, action_dim)
    state = jax.random.normal(k_state, (batch, state_dim), jnp.float32)
    action = jax.random.normal(k_action, (batch, action_dim), jnp.float32)

    q1, q2 = critic_forward(state, action, params)
    q1 = jax.block_until_ready(q1)
    q2 = jax.block_until_ready(q2)

    r1, r2 = critic_reference(state, action, params)
    assert q1.shape == (batch, 1) and q2.shape == (batch, 1)
    assert jnp.allclose(q1, r1, atol=2e-3, rtol=2e-3), "q1 mismatch vs reference"
    assert jnp.allclose(q2, r2, atol=2e-3, rtol=2e-3), "q2 mismatch vs reference"

    print("KERNEL_OK")
</pallas_src>

<mosaic_0001>
module attributes {stable_mosaic.version = 11 : i64} {
  func.func @critic_kernel(%arg0: i32, %arg1: memref<8x16xf32, #tpu.memory_space<vmem>>, %arg2: memref<8x4xf32, #tpu.memory_space<vmem>>, %arg3: memref<16x512xbf16, #tpu.memory_space<vmem>>, %arg4: memref<4x512xbf16, #tpu.memory_space<vmem>>, %arg5: memref<1x512xf32, #tpu.memory_space<vmem>>, %arg6: memref<256x256xbf16, #tpu.memory_space<vmem>>, %arg7: memref<1x256xf32, #tpu.memory_space<vmem>>, %arg8: memref<256x256xbf16, #tpu.memory_space<vmem>>, %arg9: memref<1x256xf32, #tpu.memory_space<vmem>>, %arg10: memref<1x256xf32, #tpu.memory_space<vmem>>, %arg11: memref<1x1xf32, #tpu.memory_space<vmem>>, %arg12: memref<1x256xf32, #tpu.memory_space<vmem>>, %arg13: memref<1x1xf32, #tpu.memory_space<vmem>>, %arg14: memref<8x1xf32, #tpu.memory_space<vmem>>, %arg15: memref<8x1xf32, #tpu.memory_space<vmem>>) attributes {dimension_semantics = [#tpu.dimension_semantics<parallel>], iteration_bounds = array<i64: 1>, scalar_prefetch = 0 : i64, scratch_operands = 0 : i64, tpu.core_type = #tpu.core_type<tc>, window_params = [{transform_indices = @transform_0, window_bounds = array<i64: 8, 16>}, {transform_indices = @transform_1, window_bounds = array<i64: 8, 4>}, {pipeline_mode = #tpu.pipeline_mode<synchronous>, transform_indices = @transform_2, window_bounds = array<i64: 16, 512>}, {pipeline_mode = #tpu.pipeline_mode<synchronous>, transform_indices = @transform_3, window_bounds = array<i64: 4, 512>}, {pipeline_mode = #tpu.pipeline_mode<synchronous>, transform_indices = @transform_4, window_bounds = array<i64: 1, 512>}, {pipeline_mode = #tpu.pipeline_mode<synchronous>, transform_indices = @transform_5, window_bounds = array<i64: 256, 256>}, {pipeline_mode = #tpu.pipeline_mode<synchronous>, transform_indices = @transform_6, window_bounds = array<i64: 1, 256>}, {pipeline_mode = #tpu.pipeline_mode<synchronous>, transform_indices = @transform_7, window_bounds = array<i64: 256, 256>}, {pipeline_mode = #tpu.pipeline_mode<synchronous>, transform_indices = @transform_8, window_bounds = array<i64: 1, 256>}, {pipeline_mode = #tpu.pipeline_mode<synchronous>, transform_indices = @transform_9, window_bounds = array<i64: 1, 256>}, {pipeline_mode = #tpu.pipeline_mode<synchronous>, transform_indices = @transform_10, window_bounds = array<i64: 1, 1>}, {pipeline_mode = #tpu.pipeline_mode<synchronous>, transform_indices = @transform_11, window_bounds = array<i64: 1, 256>}, {pipeline_mode = #tpu.pipeline_mode<synchronous>, transform_indices = @transform_12, window_bounds = array<i64: 1, 1>}, {transform_indices = @transform_13, window_bounds = array<i64: 8, 1>}, {transform_indices = @transform_14, window_bounds = array<i64: 8, 1>}]} {
    %c0 = arith.constant 0 : index
    %c0_0 = arith.constant 0 : index
    %0 = vector.load %arg1[%c0, %c0_0] : memref<8x16xf32, #tpu.memory_space<vmem>>, vector<8x16xf32>
    %1 = arith.truncf %0 : vector<8x16xf32> to vector<8x16xbf16>
    %c0_1 = arith.constant 0 : index
    %c0_2 = arith.constant 0 : index
    %2 = vector.load %arg2[%c0_1, %c0_2] : memref<8x4xf32, #tpu.memory_space<vmem>>, vector<8x4xf32>
    %3 = arith.truncf %2 : vector<8x4xf32> to vector<8x4xbf16>
    %c0_3 = arith.constant 0 : index
    %c0_4 = arith.constant 0 : index
    %4 = vector.load %arg3[%c0_3, %c0_4] : memref<16x512xbf16, #tpu.memory_space<vmem>>, vector<16x512xbf16>
    %cst = arith.constant dense<0.000000e+00> : vector<8x512xf32>
    %5 = tpu.matmul %1, %4, %cst {dimension_numbers = #tpu.dot_dimension_numbers<[1], [0], [0], [1], [0, 0, 1, 1], [], []>} : vector<8x16xbf16>, vector<16x512xbf16>, vector<8x512xf32> -> vector<8x512xf32>
    %c0_5 = arith.constant 0 : index
    %c0_6 = arith.constant 0 : index
    %6 = vector.load %arg4[%c0_5, %c0_6] : memref<4x512xbf16, #tpu.memory_space<vmem>>, vector<4x512xbf16>
    %cst_7 = arith.constant dense<0.000000e+00> : vector<8x512xf32>
    %7 = tpu.matmul %3, %6, %cst_7 {dimension_numbers = #tpu.dot_dimension_numbers<[1], [0], [0], [1], [0, 0, 1, 1], [], []>} : vector<8x4xbf16>, vector<4x512xbf16>, vector<8x512xf32> -> vector<8x512xf32>
    %8 = arith.addf %5, %7 : vector<8x512xf32>
    %c0_8 = arith.constant 0 : index
    %c0_9 = arith.constant 0 : index
    %9 = vector.load %arg5[%c0_8, %c0_9] : memref<1x512xf32, #tpu.memory_space<vmem>>, vector<1x512xf32>
    %10 = vector.broadcast %9 : vector<1x512xf32> to vector<8x512xf32>
    %11 = arith.addf %8, %10 : vector<8x512xf32>
    %cst_10 = arith.constant 0.000000e+00 : f32
    %12 = vector.broadcast %cst_10 : f32 to vector<8x512xf32>
    %13 = arith.maximumf %11, %12 : vector<8x512xf32>
    %14 = vector.extract_strided_slice %13 {offsets = [0, 0], sizes = [8, 256], strides = [1, 1]} : vector<8x512xf32> to vector<8x256xf32>
    %15 = vector.extract_strided_slice %13 {offsets = [0, 256], sizes = [8, 256], strides = [1, 1]} : vector<8x512xf32> to vector<8x256xf32>
    %16 = arith.truncf %14 : vector<8x256xf32> to vector<8x256xbf16>
    %c0_11 = arith.constant 0 : index
    %c0_12 = arith.constant 0 : index
    %17 = vector.load %arg6[%c0_11, %c0_12] : memref<256x256xbf16, #tpu.memory_space<vmem>>, vector<256x256xbf16>
    %cst_13 = arith.constant dense<0.000000e+00> : vector<8x256xf32>
    %18 = tpu.matmul %16, %17, %cst_13 {dimension_numbers = #tpu.dot_dimension_numbers<[1], [0], [0], [1], [0, 0, 1, 1], [], []>} : vector<8x256xbf16>, vector<256x256xbf16>, vector<8x256xf32> -> vector<8x256xf32>
    %c0_14 = arith.constant 0 : index
    %c0_15 = arith.constant 0 : index
    %19 = vector.load %arg7[%c0_14, %c0_15] : memref<1x256xf32, #tpu.memory_space<vmem>>, vector<1x256xf32>
    %20 = vector.broadcast %19 : vector<1x256xf32> to vector<8x256xf32>
    %21 = arith.addf %18, %20 : vector<8x256xf32>
    %cst_16 = arith.constant 0.000000e+00 : f32
    %22 = vector.broadcast %cst_16 : f32 to vector<8x256xf32>
    %23 = arith.maximumf %21, %22 : vector<8x256xf32>
    %24 = arith.truncf %15 : vector<8x256xf32> to vector<8x256xbf16>
    %c0_17 = arith.constant 0 : index
    %c0_18 = arith.constant 0 : index
    %25 = vector.load %arg8[%c0_17, %c0_18] : memref<256x256xbf16, #tpu.memory_space<vmem>>, vector<256x256xbf16>
    %cst_19 = arith.constant dense<0.000000e+00> : vector<8x256xf32>
    %26 = tpu.matmul %24, %25, %cst_19 {dimension_numbers = #tpu.dot_dimension_numbers<[1], [0], [0], [1], [0, 0, 1, 1], [], []>} : vector<8x256xbf16>, vector<256x256xbf16>, vector<8x256xf32> -> vector<8x256xf32>
    %c0_20 = arith.constant 0 : index
    %c0_21 = arith.constant 0 : index
    %27 = vector.load %arg9[%c0_20, %c0_21] : memref<1x256xf32, #tpu.memory_space<vmem>>, vector<1x256xf32>
    %28 = vector.broadcast %27 : vector<1x256xf32> to vector<8x256xf32>
    %29 = arith.addf %26, %28 : vector<8x256xf32>
    %cst_22 = arith.constant 0.000000e+00 : f32
    %30 = vector.broadcast %cst_22 : f32 to vector<8x256xf32>
    %31 = arith.maximumf %29, %30 : vector<8x256xf32>
    %c0_23 = arith.constant 0 : index
    %c0_24 = arith.constant 0 : index
    %32 = vector.load %arg10[%c0_23, %c0_24] : memref<1x256xf32, #tpu.memory_space<vmem>>, vector<1x256xf32>
    %33 = vector.broadcast %32 : vector<1x256xf32> to vector<8x256xf32>
    %34 = arith.mulf %23, %33 : vector<8x256xf32>
    %cst_25 = arith.constant dense<0.000000e+00> : vector<8xf32>
    %35 = vector.multi_reduction <add>, %34, %cst_25 [1] : vector<8x256xf32> to vector<8xf32>
    %36 = vector.shape_cast %35 : vector<8xf32> to vector<8x1xf32>
    %c0_26 = arith.constant 0 : index
    %c0_27 = arith.constant 0 : index
    %37 = vector.load %arg11[%c0_26, %c0_27] : memref<1x1xf32, #tpu.memory_space<vmem>>, vector<1x1xf32>
    %38 = vector.broadcast %37 : vector<1x1xf32> to vector<8x1xf32>
    %39 = arith.addf %36, %38 : vector<8x1xf32>
    %c0_28 = arith.constant 0 : index
    %c0_29 = arith.constant 0 : index
    %40 = vector.load %arg12[%c0_28, %c0_29] : memref<1x256xf32, #tpu.memory_space<vmem>>, vector<1x256xf32>
    %41 = vector.broadcast %40 : vector<1x256xf32> to vector<8x256xf32>
    %42 = arith.mulf %31, %41 : vector<8x256xf32>
    %cst_30 = arith.constant dense<0.000000e+00> : vector<8xf32>
    %43 = vector.multi_reduction <add>, %42, %cst_30 [1] : vector<8x256xf32> to vector<8xf32>
    %44 = vector.shape_cast %43 : vector<8xf32> to vector<8x1xf32>
    %c0_31 = arith.constant 0 : index
    %c0_32 = arith.constant 0 : index
    %45 = vector.load %arg13[%c0_31, %c0_32] : memref<1x1xf32, #tpu.memory_space<vmem>>, vector<1x1xf32>
    %46 = vector.broadcast %45 : vector<1x1xf32> to vector<8x1xf32>
    %47 = arith.addf %44, %46 : vector<8x1xf32>
    %c0_33 = arith.constant 0 : index
    %c0_34 = arith.constant 0 : index
    %48 = vector.load %arg14[%c0_33, %c0_34] : memref<8x1xf32, #tpu.memory_space<vmem>>, vector<8x1xf32>
    tpu.vector_store %arg14[%c0_33, %c0_34], %39 {strides = array<i32>} : memref<8x1xf32, #tpu.memory_space<vmem>>, vector<8x1xf32>,
    %c0_35 = arith.constant 0 : index
    %c0_36 = arith.constant 0 : index
    %49 = vector.load %arg15[%c0_35, %c0_36] : memref<8x1xf32, #tpu.memory_space<vmem>>, vector<8x1xf32>
    tpu.vector_store %arg15[%c0_35, %c0_36], %47 {strides = array<i32>} : memref<8x1xf32, #tpu.memory_space<vmem>>, vector<8x1xf32>,
    return
  }
  func.func @transform_0(%arg0: i32) -> (i32, i32) {
    %c0_i32 = arith.constant 0 : i32
    %c0_i32_0 = arith.constant 0 : i32
    return %arg0, %c0_i32 : i32, i32
  }
  func.func @transform_1(%arg0: i32) -> (i32, i32) {
    %c0_i32 = arith.constant 0 : i32
    %c0_i32_0 = arith.constant 0 : i32
    return %arg0, %c0_i32 : i32, i32
  }
  func.func @transform_2(%arg0: i32) -> (i32, i32) {
    %c0_i32 = arith.constant 0 : i32
    %c0_i32_0 = arith.constant 0 : i32
    %c0_i32_1 = arith.constant 0 : i32
    return %c0_i32, %c0_i32_0 : i32, i32
  }
  func.func @transform_3(%arg0: i32) -> (i32, i32) {
    %c0_i32 = arith.constant 0 : i32
    %c0_i32_0 = arith.constant 0 : i32
    %c0_i32_1 = arith.constant 0 : i32
    return %c0_i32, %c0_i32_0 : i32, i32
  }
  func.func @transform_4(%arg0: i32) -> (i32, i32) {
    %c0_i32 = arith.constant 0 : i32
    %c0_i32_0 = arith.constant 0 : i32
    %c0_i32_1 = arith.constant 0 : i32
    return %c0_i32, %c0_i32_0 : i32, i32
  }
  func.func @transform_5(%arg0: i32) -> (i32, i32) {
    %c0_i32 = arith.constant 0 : i32
    %c0_i32_0 = arith.constant 0 : i32
    %c0_i32_1 = arith.constant 0 : i32
    return %c0_i32, %c0_i32_0 : i32, i32
  }
  func.func @transform_6(%arg0: i32) -> (i32, i32) {
    %c0_i32 = arith.constant 0 : i32
    %c0_i32_0 = arith.constant 0 : i32
    %c0_i32_1 = arith.constant 0 : i32
    return %c0_i32, %c0_i32_0 : i32, i32
  }
  func.func @transform_7(%arg0: i32) -> (i32, i32) {
    %c0_i32 = arith.constant 0 : i32
    %c0_i32_0 = arith.constant 0 : i32
    %c0_i32_1 = arith.constant 0 : i32
    return %c0_i32, %c0_i32_0 : i32, i32
  }
  func.func @transform_8(%arg0: i32) -> (i32, i32) {
    %c0_i32 = arith.constant 0 : i32
    %c0_i32_0 = arith.constant 0 : i32
    %c0_i32_1 = arith.constant 0 : i32
    return %c0_i32, %c0_i32_0 : i32, i32
  }
  func.func @transform_9(%arg0: i32) -> (i32, i32) {
    %c0_i32 = arith.constant 0 : i32
    %c0_i32_0 = arith.constant 0 : i32
    %c0_i32_1 = arith.constant 0 : i32
    return %c0_i32, %c0_i32_0 : i32, i32
  }
  func.func @transform_10(%arg0: i32) -> (i32, i32) {
    %c0_i32 = arith.constant 0 : i32
    %c0_i32_0 = arith.constant 0 : i32
    %c0_i32_1 = arith.constant 0 : i32
    return %c0_i32, %c0_i32_0 : i32, i32
  }
  func.func @transform_11(%arg0: i32) -> (i32, i32) {
    %c0_i32 = arith.constant 0 : i32
    %c0_i32_0 = arith.constant 0 : i32
    %c0_i32_1 = arith.constant 0 : i32
    return %c0_i32, %c0_i32_0 : i32, i32
  }
  func.func @transform_12(%arg0: i32) -> (i32, i32) {
    %c0_i32 = arith.constant 0 : i32
    %c0_i32_0 = arith.constant 0 : i32
    %c0_i32_1 = arith.constant 0 : i32
    return %c0_i32, %c0_i32_0 : i32, i32
  }
  func.func @transform_13(%arg0: i32) -> (i32, i32) {
    %c0_i32 = arith.constant 0 : i32
    %c0_i32_0 = arith.constant 0 : i32
    return %arg0, %c0_i32 : i32, i32
  }
  func.func @transform_14(%arg0: i32) -> (i32, i32) {
    %c0_i32 = arith.constant 0 : i32
    %c0_i32_0 = arith.constant 0 : i32
    return %arg0, %c0_i32 : i32, i32
  }
}

</mosaic_0001>

<bundles_post_ra>
// kernel: tpu_custom_call.1
= control target key start
LH: loop header
LB: loop body
LE: loop exit
PB: predicated region body
PF: predicated region fallthrough
CT: control target
= control target key end

     0   :  { %s1360_s0 = inlined_call_operand.vmem [shape: f32[8,16], index: 0, kind: input, shape index: {}]   ;;  %s1361_s1 = inlined_call_operand.vmem [shape: f32[8,4], index: 1, kind: input, shape index: {}]   ;;  %s1362_s2 = inlined_call_operand.hbm [shape: bf16[16,512], index: 2, kind: input, shape index: {}]   ;;  %s1363_s3 = inlined_call_operand.vmem [shape: bf16[4,512], index: 3, kind: input, shape index: {}]   ;;  %s1364_s4 = inlined_call_operand.vmem [shape: f32[1,512], index: 4, kind: input, shape index: {}]   ;;  %s1365_s5 = inlined_call_operand.hbm [shape: bf16[256,256], index: 5, kind: input, shape index: {}]   ;;  %s1366_s6 = inlined_call_operand.vmem [shape: f32[1,256], index: 6, kind: input, shape index: {}]   ;;  %s1367_s7 = inlined_call_operand.hbm [shape: bf16[256,256], index: 7, kind: input, shape index: {}]   ;;  %s1368_s8 = inlined_call_operand.vmem [shape: f32[1,256], index: 8, kind: input, shape index: {}]   ;;  %s1369_s9 = inlined_call_operand.vmem [shape: f32[1,256], index: 9, kind: input, shape index: {}]   ;;  %s1370_s10 = inlined_call_operand.<no memory space> [shape: f32[1,1], index: 10, kind: input, shape index: {}]   ;;  %s1371_s11 = inlined_call_operand.vmem [shape: f32[1,256], index: 11, kind: input, shape index: {}]   ;;  %s1372_s13 = inlined_call_operand.vmem [shape: f32[8,1], index: 13, kind: output, shape index: {0}]   ;;  %s1373_s14 = inlined_call_operand.vmem [shape: f32[8,1], index: 14, kind: output, shape index: {1}]   ;;  %s1374_s12 = inlined_call_operand.<no memory space> [shape: f32[1,1], index: 12, kind: input, shape index: {}]  }
   0x1   :  { %v20_v0 = vstv %s1370_s10  ;;  %v22_v1 = vstv %s1374_s12 }
   0x2   :  { %21 = vst [vmem:[#allocation2] sm:$0x1] %v20_v0  ;;  %23 = vst [vmem:[#allocation3] sm:$0x1] %v22_v1 }
   0x3   :  { %24 = vsyncpa [#allocation5], 0 }
   0x4   :  { %25 = vsyncpa [#allocation7], 0  ;;  %s1173_s17 = smov [#allocation6]   ;;  %s1103_s21 = scalar_lea.hbm %s1365_s5, 4096 }
   0x5   :  { %s51_s18 = sshll.u32 %s1173_s17, 4  ;;  %p1104_p0 = scmp.ne.s32.totalorder %s1365_s5, %s1103_s21  ;;  %s52_s18 = int_to_ptr.vmem [resolvable:$true] %s51_s18 }
   0x6   :  { %p1107_p1 = scmp.lt.u32.totalorder %s1103_s21, %s1365_s5 }
   0x8   :  { %p1109_p2 = pnand %p1107_p1, %p1104_p0 }
   0xa   :  { %1112 = shalt.err (!%p1109_p2)
}
   0xb   :  { %s1113_s12 = scalar_lea.vmem %s52_s18, 4096  ;;  %p1118_p4 = scmp.lt.s32.totalorder %s52_s18, %s52_s18 }
   0xc   :  { %p1114_p3 = scmp.ne.s32.totalorder %s52_s18, %s1113_s12  ;;  %p1119_p5 = scmp.lt.s32.totalorder %s1113_s12, %s1113_s12 }
   0xe   :  { %p1120_p6 = por %p1119_p5, %p1118_p4 }
  0x10   :  { %p1121_p7 = pnand %p1120_p6, %p1114_p3 }
  0x12   :  { %1124 = shalt.err (!%p1121_p7)
}
  0x13   :  { %s1174_s25 = smov 128   ;;  %s1175_s26 = smov 8  }
  0x14   :  { %57 = dma.hbm_to_vmem [thread:$0]  %s1365_s5, 4096, %s52_s18, [#allocation7], %s1174_s25, %s1174_s25, %s1175_s26  }
  0x15   :  { %s1176_s29 = smov [#allocation4]   ;;  %s1125_s17 = scalar_lea.hbm %s1362_s2, 512 }
  0x16   :  { %s35_s30 = sshll.u32 %s1176_s29, 4  ;;  %p1126_p8 = scmp.ne.s32.totalorder %s1362_s2, %s1125_s17  ;;  %s36_s30 = int_to_ptr.vmem [resolvable:$true] %s35_s30 }
  0x17   :  { %p1129_p9 = scmp.lt.u32.totalorder %s1125_s17, %s1362_s2 }
  0x19   :  { %p1131_p10 = pnand %p1129_p9, %p1126_p8 }
  0x1b   :  { %1134 = shalt.err (!%p1131_p10)
}
  0x1c   :  { %s1135_s23 = scalar_lea.vmem %s36_s30, 512  ;;  %p1140_p12 = scmp.lt.s32.totalorder %s36_s30, %s36_s30 }
  0x1d   :  { %p1136_p11 = scmp.ne.s32.totalorder %s36_s30, %s1135_s23  ;;  %p1141_p13 = scmp.lt.s32.totalorder %s1135_s23, %s1135_s23 }
  0x1f   :  { %p1142_p0 = por %p1141_p13, %p1140_p12 }
  0x21   :  { %p1143_p1 = pnand %p1142_p0, %p1136_p11 }
  0x23   :  { %1146 = shalt.err (!%p1143_p1)
}
  0x24   :  { %s1177_s5 = smov 256   ;;  %s1178_s18 = smov 16  }
  0x25   :  { %41 = dma.hbm_to_vmem [thread:$0]  %s1362_s2, 512, %s36_s30, [#allocation5], %s1177_s5, %s1177_s5, %s1178_s18  }
  0x26   :  { %s1179_s12 = smov [#allocation8]   ;;  %s1147_s15 = scalar_lea.hbm %s1367_s7, 4096 }
  0x27   :  { %s65_s27 = sshll.u32 %s1179_s12, 4  ;;  %p1148_p2 = scmp.ne.s32.totalorder %s1367_s7, %s1147_s15  ;;  %s66_s27 = int_to_ptr.vmem [resolvable:$true] %s65_s27 }
  0x28   :  { %p1151_p3 = scmp.lt.u32.totalorder %s1147_s15, %s1367_s7 }
  0x2a   :  { %p1153_p4 = pnand %p1151_p3, %p1148_p2 }
  0x2c   :  { %1156 = shalt.err (!%p1153_p4)
}
  0x2d   :  { %s1157_s21 = scalar_lea.vmem %s66_s27, 4096  ;;  %p1162_p6 = scmp.lt.s32.totalorder %s66_s27, %s66_s27 }
  0x2e   :  { %p1158_p5 = scmp.ne.s32.totalorder %s66_s27, %s1157_s21  ;;  %p1163_p7 = scmp.lt.s32.totalorder %s1157_s21, %s1157_s21 }
  0x30   :  { %p1164_p8 = por %p1163_p7, %p1162_p6 }
  0x32   :  { %p1165_p9 = pnand %p1164_p8, %p1158_p5 }
  0x34   :  { %1168 = shalt.err (!%p1165_p9)
}
  0x35   :  { %71 = dma.hbm_to_vmem [thread:$0]  %s1367_s7, 4096, %s66_s27, [#allocation7], %s1174_s25, %s1174_s25, %s1175_s26  }
  0x36   :  { %1169 = dma.done.wait [#allocation5], 512  }
  0x37   :  { %1170 = vsyncadd [#allocation5], 4294966784 }
  0x38   :  { %1171 = dma.done.wait [#allocation7], 8192  }
  0x39   :  { %1172 = vsyncadd [#allocation7], 4294959104  ;;  %v106_v2 = vlaneseq  ;;  %v1180_v3 = vmov 1983009808   ;;  %v1181_v5 = vmov 0   ;;  %v100_v9 = vld [vmem:[%s1363_s3] sm:$0xff] }
  0x3a   :  { %v104_v4 = vunpack.c.l.s4 %v1180_v3  ;;  %168 = vmatprep.mubr.bf16.mxu0 %v1181_v5  ;;  %209 = vmatprep.mubr.bf16.mxu1 %v1181_v5  ;;  %vm123_vm0 = vcmask 1041408   ;;  %v102_v11 = vcombine.high %v100_v9, %v100_v9  ;;  %v94_v12 = vld [vmem:[%s1361_s1] sm:$0xff]  ;;  %vm119_vm1 = vcmask 31744   ;;  %v1004_v23 = vld [vmem:[#allocation4 + $0x8] ss:$16 sps:$4 sm:$0xff]  }
  0x3b   :  { %v1305_v6 = vshrl.u32 %v106_v2, 7  ;;  %v1003_v16 = vld [vmem:[#allocation4 + $0x4] ss:$16 sps:$4 sm:$0xff]   ;;  %v95_v19 = vpack.c.bf16 %v94_v12, %v94_v12  ;;  %v1006_v20 = vld [vmem:[#allocation4 + $0xc] ss:$16 sps:$4 sm:$0xff]   ;;  %vm238_vm2 = vcmask 130048  }
  0x3c   :  { %v105_v7 = vunpack.c.0.s8 %v104_v4  ;;  %v1001_v21 = vld [vmem:[#allocation4] ss:$16 sps:$4 sm:$0xff]   ;;  %v1009_v22 = vld [vmem:[#allocation6 + $0x4] ss:$8 sps:$4 sm:$0xff]   ;;  %v1015_v28 = vld [vmem:[#allocation6 + $0x14] ss:$8 sps:$4 sm:$0xff]  }
  0x3d   :  { %v1012_v24 = vld [vmem:[#allocation8 + $0x4] ss:$8 sps:$4 sm:$0xff]   ;;  %v1007_v27 = vld [vmem:[#allocation6] ss:$8 sps:$4 sm:$0xff]   ;;  %v1018_v30 = vld [vmem:[#allocation8 + $0x14] ss:$8 sps:$4 sm:$0xff]  }
  0x3e   :  { %v108_v8 = vsub.s32 %v105_v7, %v1305_v6  ;;  %v92_v25 = vld [vmem:[%s1360_s0] sm:$0xff]  ;;  %v1013_v31 = vld [vmem:[#allocation6 + $0x10] ss:$8 sps:$4 sm:$0xff]   ;;  %vm902_vm3 = vcmask 7168  }
  0x3f   :  { %v93_v26 = vpack.c.bf16 %v92_v25, %v92_v25  ;;  %v1010_v29 = vld [vmem:[#allocation8] ss:$8 sps:$4 sm:$0xff]   ;;  %v1021_v32 = vld [vmem:[#allocation6 + $0x24] ss:$8 sps:$4 sm:$0xff]   ;;  %v1016_v33 = vld [vmem:[#allocation8 + $0x10] ss:$8 sps:$4 sm:$0xff]  }
  0x40   :  { %v109_v10 = vrot.slane %v100_v9, %v108_v8  ;;  %v116_v15 = vrot.slane %v102_v11, %v108_v8  ;;  %v1024_v34 = vld [vmem:[#allocation8 + $0x24] ss:$8 sps:$4 sm:$0xff]   ;;  %v1019_v35 = vld [vmem:[#allocation6 + $0x20] ss:$8 sps:$4 sm:$0xff]   ;;  %v1027_v36 = vld [vmem:[#allocation6 + $0x34] ss:$8 sps:$4 sm:$0xff]  }
  0x41   :  { %v1022_v37 = vld [vmem:[#allocation8 + $0x20] ss:$8 sps:$4 sm:$0xff]   ;;  %v1030_v38 = vld [vmem:[#allocation8 + $0x34] ss:$8 sps:$4 sm:$0xff]   ;;  %v1025_v39 = vld [vmem:[#allocation6 + $0x30] ss:$8 sps:$4 sm:$0xff]  }
  0x42   :  { %v117_v13 = vcombine.high %v109_v10, %v109_v10  ;;  %v125_v14 = vsel %vm123_vm0, %v109_v10, 0  ;;  %v118_v17 = vcombine.high %v116_v15, %v116_v15  ;;  %v131_v18 = vsel %vm123_vm0, %v116_v15, 0  ;;  %v1033_v40 = vld [vmem:[#allocation6 + $0x44] ss:$8 sps:$4 sm:$0xff]   ;;  %v1028_v41 = vld [vmem:[#allocation8 + $0x30] ss:$8 sps:$4 sm:$0xff]  }
  0x43   :  { %v1036_v42 = vld [vmem:[#allocation8 + $0x44] ss:$8 sps:$4 sm:$0xff]   ;;  %v1031_v43 = vld [vmem:[#allocation6 + $0x40] ss:$8 sps:$4 sm:$0xff]   ;;  %v1039_v44 = vld [vmem:[#allocation6 + $0x54] ss:$8 sps:$4 sm:$0xff]  }
  0x44   :  { %915 = vmatprep.subr.msk.bf16.mxu0 %vm123_vm0, %v117_v13  ;;  %917 = vmatprep.subr.msk.bf16.mxu1 %vm123_vm0, %v118_v17  ;;  %v1034_v45 = vld [vmem:[#allocation8 + $0x40] ss:$8 sps:$4 sm:$0xff]   ;;  %v1037_v46 = vld [vmem:[#allocation6 + $0x50] ss:$8 sps:$4 sm:$0xff]   ;;  %v1042_v47 = vld [vmem:[#allocation8 + $0x54] ss:$8 sps:$4 sm:$0xff]  }
  0x45   :  { %137 = vmatpush1.bf16.msra.mxu0 %v125_v14  ;;  %178 = vmatpush1.bf16.msra.mxu1 %v131_v18  ;;  %v1040_v48 = vld [vmem:[#allocation8 + $0x50] ss:$8 sps:$4 sm:$0xff]   ;;  %v1045_v49 = vld [vmem:[#allocation6 + $0x64] ss:$8 sps:$4 sm:$0xff]   ;;  %v1043_v51 = vld [vmem:[#allocation6 + $0x60] ss:$8 sps:$4 sm:$0xff]  }
  0x46   :  { %242 = vmatprep.subr.bf16.mxu0 %v1003_v16  ;;  %283 = vmatprep.subr.bf16.mxu1 %v1006_v20  ;;  %v1048_v50 = vld [vmem:[#allocation8 + $0x64] ss:$8 sps:$4 sm:$0xff]   ;;  %v1051_v52 = vld [vmem:[#allocation6 + $0x74] ss:$8 sps:$4 sm:$0xff]   ;;  %v1046_v53 = vld [vmem:[#allocation8 + $0x60] ss:$8 sps:$4 sm:$0xff]  }
  0x47   :  { %v1054_v54 = vld [vmem:[#allocation8 + $0x74] ss:$8 sps:$4 sm:$0xff]   ;;  %v1049_v55 = vld [vmem:[#allocation6 + $0x70] ss:$8 sps:$4 sm:$0xff]   ;;  %v1057_v56 = vld [vmem:[#allocation6 + $0x84] ss:$8 sps:$4 sm:$0xff]  }
  0x48   :  { %916 = vmatmul.mubr.msk.bf16.vlgmr.msra.gmra.mrb[0].mxu0 %vm119_vm1, %v95_v19  ;;  %918 = vmatmul.mubr.msk.bf16.vlgmr.msra.gmra.mrb[0].mxu1 %vm119_vm1, %v95_v19  ;;  %v1052_v57 = vld [vmem:[#allocation8 + $0x70] ss:$8 sps:$4 sm:$0xff]   ;;  %v1060_v58 = vld [vmem:[#allocation8 + $0x84] ss:$8 sps:$4 sm:$0xff]   ;;  %v1055_v59 = vld [vmem:[#allocation6 + $0x80] ss:$8 sps:$4 sm:$0xff]  }
  0x49   :  { %243 = vmatpush1.bf16.msra.mxu0 %v1001_v21  ;;  %274 = vmatprep.mubr.bf16.mxu0 %v1181_v5  ;;  %v1063_v60 = vld [vmem:[#allocation6 + $0x94] ss:$8 sps:$4 sm:$0xff]   ;;  %v1058_v61 = vld [vmem:[#allocation8 + $0x80] ss:$8 sps:$4 sm:$0xff]   ;;  %v1061_v63 = vld [vmem:[#allocation6 + $0x90] ss:$8 sps:$4 sm:$0xff]  }
  0x4a   :  { %560 = vmatprep.subr.bf16.mxu0 %v1009_v22  ;;  %284 = vmatpush1.bf16.msra.mxu1 %v1004_v23  ;;  %v1066_v62 = vld [vmem:[#allocation8 + $0x94] ss:$8 sps:$4 sm:$0xff]   ;;  %v1069_v0 = vld [vmem:[#allocation6 + $0xa4] ss:$8 sps:$4 sm:$0xff]   ;;  %v1064_v1 = vld [vmem:[#allocation8 + $0x90] ss:$8 sps:$4 sm:$0xff]  }
  0x4b   :  { %315 = vmatprep.mubr.bf16.mxu1 %v1181_v5  ;;  %809 = vmatprep.subr.bf16.mxu1 %v1012_v24  ;;  %v1072_v2 = vld [vmem:[#allocation8 + $0xa4] ss:$8 sps:$4 sm:$0xff]   ;;  %v1067_v3 = vld [vmem:[#allocation6 + $0xa0] ss:$8 sps:$4 sm:$0xff]   ;;  %v1075_v4 = vld [vmem:[#allocation6 + $0xb4] ss:$8 sps:$4 sm:$0xff]  }
  0x4c   :  { %v1070_v5 = vld [vmem:[#allocation8 + $0xa0] ss:$8 sps:$4 sm:$0xff]   ;;  %v1073_v7 = vld [vmem:[#allocation6 + $0xb0] ss:$8 sps:$4 sm:$0xff]   ;;  %v1078_v8 = vld [vmem:[#allocation8 + $0xb4] ss:$8 sps:$4 sm:$0xff]  }
  0x4d   :  { %v1076_v9 = vld [vmem:[#allocation8 + $0xb0] ss:$8 sps:$4 sm:$0xff]   ;;  %v1081_v10 = vld [vmem:[#allocation6 + $0xc4] ss:$8 sps:$4 sm:$0xff]   ;;  %v1079_v11 = vld [vmem:[#allocation6 + $0xc0] ss:$8 sps:$4 sm:$0xff]  }
  0x4e   :  { %v1084_v12 = vld [vmem:[#allocation8 + $0xc4] ss:$8 sps:$4 sm:$0xff]   ;;  %v1082_v13 = vld [vmem:[#allocation8 + $0xc0] ss:$8 sps:$4 sm:$0xff]   ;;  %v1085_v14 = vld [vmem:[#allocation6 + $0xd0] ss:$8 sps:$4 sm:$0xff]  }
  0x4f   :  { %v1087_v15 = vld [vmem:[#allocation6 + $0xd4] ss:$8 sps:$4 sm:$0xff]   ;;  %v1088_v17 = vld [vmem:[#allocation8 + $0xd0] ss:$8 sps:$4 sm:$0xff]   ;;  %v1093_v18 = vld [vmem:[#allocation6 + $0xe4] ss:$8 sps:$4 sm:$0xff]  }
  0x50   :  { %923 = vmatmul.mubr.msk.bf16.vlgmr.msra.gmra.mrb[4].mxu0 %vm238_vm2, %v93_v26  ;;  %924 = vmatmul.mubr.msk.bf16.vlgmr.msra.gmra.mrb[4].mxu1 %vm238_vm2, %v93_v26  ;;  %v1090_v16 = vld [vmem:[#allocation8 + $0xd4] ss:$8 sps:$4 sm:$0xff]   ;;  %v1091_v19 = vld [vmem:[#allocation6 + $0xe0] ss:$8 sps:$4 sm:$0xff]   ;;  %v1096_v20 = vld [vmem:[#allocation8 + $0xe4] ss:$8 sps:$4 sm:$0xff]  }
  0x51   :  { %561 = vmatpush1.bf16.msra.mxu0 %v1007_v27  ;;  %810 = vmatpush1.bf16.msra.mxu1 %v1010_v29  ;;  %v1094_v21 = vld [vmem:[#allocation8 + $0xe0] ss:$8 sps:$4 sm:$0xff]   ;;  %v1099_v22 = vld [vmem:[#allocation6 + $0xf4] ss:$8 sps:$4 sm:$0xff]   ;;  %v1097_v23 = vld [vmem:[#allocation6 + $0xf0] ss:$8 sps:$4 sm:$0xff]  }
  0x52   :  { %562 = vmatprep.subr.bf16.mxu0 %v1015_v28  ;;  %811 = vmatprep.subr.bf16.mxu1 %v1018_v30  ;;  %v1102_v24 = vld [vmem:[#allocation8 + $0xf4] ss:$8 sps:$4 sm:$0xff]   ;;  %v1100_v25 = vld [vmem:[#allocation8 + $0xf0] ss:$8 sps:$4 sm:$0xff]  }
  0x55   :  { %563 = vmatpush1.bf16.msra.mxu0 %v1013_v31  ;;  %812 = vmatpush1.bf16.msra.mxu1 %v1016_v33 }
  0x56   :  { %564 = vmatprep.subr.bf16.mxu0 %v1021_v32  ;;  %813 = vmatprep.subr.bf16.mxu1 %v1024_v34  ;;  %v1322_v32 = vsub.s32 0, %v1305_v6  ;;  %v324_v34 = vld [vmem:[%s1364_s4] sm:$0xf] }
  0x59   :  { %565 = vmatpush1.bf16.msra.mxu0 %v1019_v35  ;;  %814 = vmatpush1.bf16.msra.mxu1 %v1022_v37  ;;  %v1328_v35 = vsub.s32 1, %v1305_v6  ;;  %v336_v37 = vsub.s32 2, %v1305_v6 }
  0x5a   :  { %566 = vmatprep.subr.bf16.mxu0 %v1027_v36  ;;  %815 = vmatprep.subr.bf16.mxu1 %v1030_v38  ;;  %v340_v38 = vsub.s32 3, %v1305_v6 }
  0x5d   :  { %567 = vmatpush1.bf16.msra.mxu0 %v1025_v39  ;;  %816 = vmatpush1.bf16.msra.mxu1 %v1028_v41  ;;  %v329_v39 = vrot.slane %v324_v34, %v1322_v32  ;;  %v333_v41 = vrot.slane %v324_v34, %v1328_v35 }
  0x5e   :  { %568 = vmatprep.subr.bf16.mxu0 %v1033_v40  ;;  %817 = vmatprep.subr.bf16.mxu1 %v1036_v42 }
  0x61   :  { %569 = vmatpush1.bf16.msra.mxu0 %v1031_v43  ;;  %818 = vmatpush1.bf16.msra.mxu1 %v1034_v45 }
  0x62   :  { %570 = vmatprep.subr.bf16.mxu0 %v1039_v44  ;;  %819 = vmatprep.subr.bf16.mxu1 %v1042_v47  ;;  %v337_v44 = vrot.slane %v324_v34, %v336_v37 }
  0x65   :  { %571 = vmatpush1.bf16.msra.mxu0 %v1037_v46  ;;  %820 = vmatpush1.bf16.msra.mxu1 %v1040_v48  ;;  %v341_v48 = vrot.slane %v324_v34, %v340_v38 }
  0x66   :  { %572 = vmatprep.subr.bf16.mxu0 %v1045_v49  ;;  %821 = vmatprep.subr.bf16.mxu1 %v1048_v50 }
  0x69   :  { %573 = vmatpush1.bf16.msra.mxu0 %v1043_v51  ;;  %822 = vmatpush1.bf16.msra.mxu1 %v1046_v53 }
  0x6a   :  { %574 = vmatprep.subr.bf16.mxu0 %v1051_v52  ;;  %823 = vmatprep.subr.bf16.mxu1 %v1054_v54 }
  0x6d   :  { %575 = vmatpush1.bf16.msra.mxu0 %v1049_v55  ;;  %824 = vmatpush1.bf16.msra.mxu1 %v1052_v57 }
  0x6e   :  { %576 = vmatprep.subr.bf16.mxu0 %v1057_v56  ;;  %825 = vmatprep.subr.bf16.mxu1 %v1060_v58 }
  0x71   :  { %577 = vmatpush1.bf16.msra.mxu0 %v1055_v59  ;;  %826 = vmatpush1.bf16.msra.mxu1 %v1058_v61 }
  0x72   :  { %578 = vmatprep.subr.bf16.mxu0 %v1063_v60  ;;  %827 = vmatprep.subr.bf16.mxu1 %v1066_v62 }
  0x75   :  { %579 = vmatpush1.bf16.msra.mxu0 %v1061_v63  ;;  %828 = vmatpush1.bf16.msra.mxu1 %v1064_v1 }
  0x76   :  { %580 = vmatprep.subr.bf16.mxu0 %v1069_v0  ;;  %829 = vmatprep.subr.bf16.mxu1 %v1072_v2  ;;  %v388_v2 = vld [vmem:[%s1366_s6] sm:$0x3] }
  0x79   :  { %581 = vmatpush1.bf16.msra.mxu0 %v1067_v3  ;;  %830 = vmatpush1.bf16.msra.mxu1 %v1070_v5  ;;  %v637_v3 = vld [vmem:[%s1368_s8] sm:$0x3]  ;;  %v397_v5 = vrot.slane %v388_v2, %v1328_v35 }
  0x7a   :  { %582 = vmatprep.subr.bf16.mxu0 %v1075_v4  ;;  %831 = vmatprep.subr.bf16.mxu1 %v1078_v8  ;;  %v393_v4 = vrot.slane %v388_v2, %v1322_v32  ;;  %v642_v8 = vrot.slane %v637_v3, %v1322_v32 }
  0x7d   :  { %583 = vmatpush1.bf16.msra.mxu0 %v1073_v7  ;;  %832 = vmatpush1.bf16.msra.mxu1 %v1076_v9  ;;  %v852_v7 = vld [vmem:[%s1369_s9] sm:$0x3] }
  0x7e   :  { %584 = vmatprep.subr.bf16.mxu0 %v1081_v10  ;;  %833 = vmatprep.subr.bf16.mxu1 %v1084_v12  ;;  %v877_v10 = vld [vmem:[%s1371_s11] sm:$0x3] }
  0x81   :  { %585 = vmatpush1.bf16.msra.mxu0 %v1079_v11  ;;  %834 = vmatpush1.bf16.msra.mxu1 %v1082_v13  ;;  %v646_v11 = vrot.slane %v637_v3, %v1328_v35 }
  0x82   :  { %586 = vmatprep.subr.bf16.mxu0 %v1087_v15  ;;  %835 = vmatprep.subr.bf16.mxu1 %v1090_v16 }
  0x85   :  { %587 = vmatpush1.bf16.msra.mxu0 %v1085_v14  ;;  %836 = vmatpush1.bf16.msra.mxu1 %v1088_v17  ;;  %v857_v14 = vrot.slane %v852_v7, %v1322_v32 }
  0x86   :  { %588 = vmatprep.subr.bf16.mxu0 %v1093_v18  ;;  %837 = vmatprep.subr.bf16.mxu1 %v1096_v20  ;;  %v861_v18 = vrot.slane %v852_v7, %v1328_v35 }
  0x89   :  { %589 = vmatpush1.bf16.msra.mxu0 %v1091_v19  ;;  %838 = vmatpush1.bf16.msra.mxu1 %v1094_v21  ;;  %v882_v21 = vrot.slane %v877_v10, %v1322_v32 }
  0x8a   :  { %590 = vmatprep.subr.bf16.mxu0 %v1099_v22  ;;  %839 = vmatprep.subr.bf16.mxu1 %v1102_v24 }
  0x8d   :  { %591 = vmatpush1.bf16.msra.mxu0 %v1097_v23  ;;  %840 = vmatpush1.bf16.msra.mxu1 %v1100_v25 }
 0x11b   :  { %v170_v26 = vpop.f32.mrb[0].mxu0  ;;  %v211_v29 = vpop.f32.mrb[0].mxu1 }
 0x11c   :  { %v172_v27 = vpop.f32.mrb[1].mxu0  ;;  %v213_v31 = vpop.f32.mrb[1].mxu1 }
 0x11d   :  { %v174_v28 = vpop.f32.mrb[2].mxu0  ;;  %v215_v33 = vpop.f32.mrb[2].mxu1 }
 0x11e   :  { %v175_v30 = vpop.f32.mrb[3].mxu0  ;;  %v216_v36 = vpop.f32.mrb[3].mxu1 }
 0x123   :  { %v276_v40 = vpop.f32.mrb[4].mxu0  ;;  %v317_v47 = vpop.f32.mrb[4].mxu1 }
 0x124   :  { %v277_v42 = vadd.f32 %v276_v40, %v170_v26  ;;  %v278_v43 = vpop.f32.mrb[5].mxu0  ;;  %v318_v50 = vadd.f32 %v317_v47, %v211_v29  ;;  %v319_v52 = vpop.f32.mrb[5].mxu1  ;;  %v886_v26 = vrot.slane %v877_v10, %v1328_v35 }
 0x125   :  { %v279_v45 = vadd.f32 %v278_v43, %v172_v27  ;;  %v280_v46 = vpop.f32.mrb[6].mxu0  ;;  %v320_v54 = vadd.f32 %v319_v52, %v213_v31  ;;  %v321_v55 = vpop.f32.mrb[6].mxu1 }
 0x126   :  { %v346_v49 = vadd.f32 %v329_v39, %v277_v42  ;;  %v281_v51 = vpop.f32.mrb[7].mxu0  ;;  %v348_v56 = vadd.f32 %v337_v44, %v318_v50  ;;  %v322_v57 = vpop.f32.mrb[7].mxu1  ;;  %v989_v39 = vld [vmem:[#allocation2] ss:$0 sm:$0xff] }
 0x127   :  { %v347_v53 = vadd.f32 %v333_v41, %v279_v45  ;;  %v349_v59 = vadd.f32 %v341_v48, %v320_v54  ;;  %v990_v41 = vld [vmem:[#allocation3] ss:$0 sm:$0xff] }
 0x128   :  { %v350_v6 = vmax.f32 %v346_v49, 0.0  ;;  %v352_v60 = vmax.f32 %v348_v56, 0.0 }
 0x129   :  { %v351_v58 = vmax.f32 %v347_v53, 0.0  ;;  %v353_v62 = vmax.f32 %v349_v59, 0.0 }
 0x12a   :  { %v354_v63 = vpack.c.bf16 %v350_v6, %v350_v6  ;;  %v603_v1 = vpack.c.bf16 %v352_v60, %v352_v60 }
 0x12b   :  { %v355_v61 = vpack.c.bf16 %v351_v58, %v351_v58  ;;  %v604_v0 = vpack.c.bf16 %v353_v62, %v353_v62 }
 0x12d   :  { %592 = vmatprep.mubr.bf16.mxu0 %v355_v61  ;;  %841 = vmatprep.mubr.bf16.mxu1 %v604_v0 }
 0x12e   :  { %593 = vmatmul.mubr.bf16.vlgmr.msra.gmra.mrb[8].mxu0 %v354_v63  ;;  %842 = vmatmul.mubr.bf16.vlgmr.msra.gmra.mrb[8].mxu1 %v603_v1 }
 0x201   :  { %v594_v9 = vpop.f32.mrb[8].mxu0  ;;  %v843_v17 = vpop.f32.mrb[8].mxu1 }
 0x202   :  { %v595_v12 = vadd.f32 %v594_v9, %v393_v4  ;;  %v596_v13 = vpop.f32.mrb[9].mxu0  ;;  %v844_v20 = vadd.f32 %v843_v17, %v642_v8  ;;  %v845_v23 = vpop.f32.mrb[9].mxu1 }
 0x203   :  { %v597_v15 = vadd.f32 %v596_v13, %v397_v5  ;;  %v598_v16 = vpop.f32.mrb[10].mxu0  ;;  %v846_v25 = vadd.f32 %v845_v23, %v646_v11  ;;  %v847_v27 = vpop.f32.mrb[10].mxu1 }
 0x204   :  { %v601_v19 = vmax.f32 %v595_v12, 0.0  ;;  %v599_v22 = vpop.f32.mrb[11].mxu0  ;;  %v850_v28 = vmax.f32 %v844_v20, 0.0  ;;  %v848_v29 = vpop.f32.mrb[11].mxu1 }
 0x205   :  { %v602_v24 = vmax.f32 %v597_v15, 0.0  ;;  %v851_v31 = vmax.f32 %v846_v25, 0.0 }
 0x206   :  { %v864_v30 = vmul.f32 %v857_v14, %v601_v19  ;;  %v889_v34 = vmul.f32 %v882_v21, %v850_v28 }
 0x207   :  { %v865_v33 = vmul.f32 %v861_v18, %v602_v24  ;;  %v890_v36 = vmul.f32 %v886_v26, %v851_v31 }
 0x209   :  { %v866_v37 = vadd.f32 %v865_v33, %v864_v30  ;;  %v891_v38 = vadd.f32 %v890_v36, %v889_v34 }
 0x20b   :  { %867 = vadd.xlane.f32.xlu0 %v866_v37 }
 0x20f   :  { %892 = vadd.xlane.f32.xlu0 %v891_v38 }
 0x298   :  { %v868_v32 = vpop.xlane.xlu0 %867 }
 0x299   :  { %v876_v40 = vadd.f32 %v989_v39, %v868_v32 }
 0x29b   :  { %903 = vst.msk [vmem:[%s1372_s13] sm:$0xff] %vm902_vm3, %v876_v40 }
 0x29c   :  { %v893_v35 = vpop.xlane.xlu0 %892 }
 0x29d   :  { %v901_v42 = vadd.f32 %v990_v41, %v893_v35 }
 0x29f   :  { %904 = vst.msk [vmem:[%s1373_s14] sm:$0xff] %vm902_vm3, %v901_v42 }
 0x2a0   :  { %913 = vsyncpa [#allocation5], 1 }
 0x2a1   :  { %914 = vsyncpa [#allocation7], 1 }

</bundles_post_ra>
